<compile_context>
chip_gen: v5e
topology: v5e:2x2
jax: 0.10.0
libtpu: 0.0.40
codegen_flags: <defaults>
</compile_context>

<pallas_src>
import functools

import jax
import jax.numpy as jnp
from jax import lax
from jax.experimental import pallas as pl
from jax.experimental.pallas import tpu as pltpu

_EPS = 1e-8


def _rel_err_kernel(pred_ref, true_ref, out_ref, *,
                    rows, tile_rows, slab_rows, lane,
                    full_blocks, steps_per_chunk,
                    needs_mask, approx_reciprocal):
    """Partial sums of |p - t| / (|t| + eps), one (8, lane) bin-set per chunk."""
    p = pl.program_id(0)                 # parallel chunk axis (megacore)
    s = pl.program_id(1)                 # reduction step within the chunk
    i = p * steps_per_chunk + s          # logical block index (may be a ghost)

    n_slabs = tile_rows // slab_rows
    eps = jnp.float32(_EPS)

    def block_sum(masked):
        # Stream the (tile_rows, lane) block in slab_rows-row slabs: bounded
        # VMEM temporaries, accumulation by whole-vreg VPU adds only.
        def body(g, acc):
            off = pl.multiple_of(g * slab_rows, slab_rows)
            pv = pred_ref[pl.ds(off, slab_rows), :].astype(jnp.float32)
            tv = true_ref[pl.ds(off, slab_rows), :].astype(jnp.float32)
            num = jnp.abs(pv - tv)
            den = jnp.abs(tv) + eps
            if approx_reciprocal:
                rel = num * pl.reciprocal(den, approx=True)   # EUP slot
            else:
                rel = num / den
            if masked:
                row_ids = (i * tile_rows + off) + lax.broadcasted_iota(
                    jnp.int32, (slab_rows, lane), 0)
                rel = jnp.where(row_ids < rows, rel, jnp.float32(0.0))
            return acc + rel.reshape(slab_rows // 8, 8, lane).sum(axis=0)

        return lax.fori_loop(0, n_slabs, body,
                             jnp.zeros((8, lane), jnp.float32))

    @pl.when(s == 0)
    def _():
        out_ref[...] = jnp.zeros_like(out_ref)

    if not needs_mask:
        # Every logical block is fully in-bounds: single unmasked path.
        out_ref[...] += block_sum(masked=False)
    else:
        is_full = i < full_blocks
        # Full blocks never pay the iota/compare/select cost.

        @pl.when(is_full)
        def _():
            out_ref[...] += block_sum(masked=False)

        # Partial last block and ghost blocks: masked to zero contribution.
        @pl.when(jnp.logical_not(is_full))
        def _():
            out_ref[...] += block_sum(masked=True)


def relative_error_loss(y_pred, y_true, *, lane=128, max_block_bytes=4 << 20,
                        num_chunks=2, approx_reciprocal=False):
    assert y_pred.shape == y_true.shape
    total_n = int(y_pred.size)

    pred_flat = jnp.ravel(y_pred)        # contiguous reshape: free
    true_flat = jnp.ravel(y_true)

    rows = total_n // lane
    rem = total_n - rows * lane

    # Below one (8, 128) vreg of payload a kernel launch is pure overhead
    # (also covers rows == 0): do the whole reduction in plain JAX.
    if rows < 8:
        pf = pred_flat.astype(jnp.float32)
        tf = true_flat.astype(jnp.float32)
        return jnp.sum(jnp.abs(pf - tf) / (jnp.abs(tf) + _EPS)) / total_n

    # Lane-unaligned tail (< 128 elements, rare): sum it in plain JAX and fold
    # into the mean.  Avoids the old concatenate-padding path that copied both
    # tensors through HBM.
    main_n = rows * lane
    if rem:
        pt = pred_flat[main_n:].astype(jnp.float32)
        tt = true_flat[main_n:].astype(jnp.float32)
        tail_sum = jnp.sum(jnp.abs(pt - tt) / (jnp.abs(tt) + _EPS))
        # NOTE: this main-slab slice may materialize one copy, but only for the
        # rare total_n % 128 != 0 case; the aligned case is fully zero-copy.
        pred_flat = pred_flat[:main_n]
        true_flat = true_flat[:main_n]
    else:
        tail_sum = jnp.float32(0.0)

    pred2d = pred_flat.reshape(rows, lane)
    true2d = true_flat.reshape(rows, lane)

    # Tile selection: ~4 MiB per input block in the input's native dtype
    # (8192 rows f32, 16384 rows bf16, ...). 2 inputs x 2 pipeline buffers
    # = 16 MiB, comfortably inside the 32 MiB scoped-VMEM limit we request.
    itemsize = max(jnp.dtype(y_pred.dtype).itemsize,
                   jnp.dtype(y_true.dtype).itemsize)
    max_tile_rows = max(8, max_block_bytes // (lane * itemsize))
    tile_rows = min(max_tile_rows, (rows // 8) * 8)       # multiple of 8
    slab_rows = 1024 if tile_rows % 1024 == 0 else tile_rows

    blocks = pl.cdiv(rows, tile_rows)                     # python ints
    full_blocks = rows // tile_rows                       # fully-valid blocks
    num_chunks = max(1, min(num_chunks, blocks))          # 2 -> both v7x TCs
    steps_per_chunk = pl.cdiv(blocks, num_chunks)
    total_logical = num_chunks * steps_per_chunk
    needs_mask = total_logical != full_blocks             # partial and/or ghosts

    def in_map(p, s):
        i = p * steps_per_chunk + s
        if total_logical != blocks:
            # Ghost blocks: clamp so the DMA stays in-bounds; the kernel masks
            # their contribution to zero using the *unclamped* logical index.
            i = jnp.minimum(i, blocks - 1)
        return (i, 0)

    kernel = functools.partial(
        _rel_err_kernel,
        rows=rows, tile_rows=tile_rows, slab_rows=slab_rows, lane=lane,
        full_blocks=full_blocks, steps_per_chunk=steps_per_chunk,
        needs_mask=needs_mask, approx_reciprocal=approx_reciprocal)

    partials = pl.pallas_call(
        kernel,
        out_shape=jax.ShapeDtypeStruct((num_chunks * 8, lane), jnp.float32),
        grid_spec=pltpu.PrefetchScalarGridSpec(
            num_scalar_prefetch=0,
            grid=(num_chunks, steps_per_chunk),
            in_specs=[
                pl.BlockSpec((tile_rows, lane), in_map),
                pl.BlockSpec((tile_rows, lane), in_map),
            ],
            out_specs=pl.BlockSpec((8, lane), lambda p, s: (p, 0)),
        ),
        compiler_params=pltpu.CompilerParams(
            dimension_semantics=("parallel", "arbitrary"),
            vmem_limit_bytes=32 * 1024 * 1024),
    )(pred2d, true2d)

    return (jnp.sum(partials) + tail_sum) / jnp.float32(total_n)


def _reference(y_pred, y_true):
    return jnp.mean(jnp.abs(y_pred - y_true) / (jnp.abs(y_true) + _EPS))


if __name__ == "__main__":
    key = jax.random.PRNGKey(0)
    k1, k2, k3, k4, k5, k6 = jax.random.split(key, 6)

    # 1) Primary test: NCHW-like shape from the module's context
    #    (single block, single chunk, no masking).
    shape = (2, 4, 16, 16)
    y_pred = jax.random.normal(k1, shape, dtype=jnp.float32)
    y_true = jax.random.normal(k2, shape, dtype=jnp.float32)
    loss = jax.block_until_ready(relative_error_loss(y_pred, y_true))
    ref = _reference(y_pred, y_true)
    assert jnp.allclose(loss, ref, rtol=1e-4, atol=1e-6), (loss, ref)

    # 2) Multi-block test: small max_block_bytes forces tile_rows=256 ->
    #    9 blocks over 2 chunks (one ghost block + one partial block), so the
    #    parallel axis, gated masking and ghost clamping are all exercised.
    shape2 = (4, 4, 257, 64)              # 263168 elems -> rows = 2056
    y_pred2 = jax.random.normal(k3, shape2, dtype=jnp.float32)
    y_true2 = jax.random.normal(k4, shape2, dtype=jnp.float32)
    loss2 = jax.block_until_ready(
        relative_error_loss(y_pred2, y_true2, max_block_bytes=256 * 128 * 4))
    ref2 = _reference(y_pred2, y_true2)
    assert jnp.allclose(loss2, ref2, rtol=1e-4, atol=1e-6), (loss2, ref2)

    # 3) Lane-unaligned test: total_n % 128 != 0 -> JAX tail fold-in plus a
    #    masked partial last block inside the kernel.
    shape3 = (9, 200)                     # 1800 elems -> rows = 14, tail = 8
    y_pred3 = jax.random.normal(k5, shape3, dtype=jnp.float32)
    y_true3 = jax.random.normal(k6, shape3, dtype=jnp.float32)
    loss3 = jax.block_until_ready(relative_error_loss(y_pred3, y_true3))
    ref3 = _reference(y_pred3, y_true3)
    assert jnp.allclose(loss3, ref3, rtol=1e-4, atol=1e-6), (loss3, ref3)

    print("KERNEL_OK")
</pallas_src>

<mosaic_0001>
module attributes {stable_mosaic.version = 11 : i64} {
  func.func @_rel_err_kernel(%arg0: i32, %arg1: i32, %arg2: memref<16x128xf32, #tpu.memory_space<vmem>>, %arg3: memref<16x128xf32, #tpu.memory_space<vmem>>, %arg4: memref<8x128xf32, #tpu.memory_space<vmem>>) attributes {dimension_semantics = [#tpu.dimension_semantics<parallel>, #tpu.dimension_semantics<arbitrary>], iteration_bounds = array<i64: 1, 1>, scalar_prefetch = 0 : i64, scratch_operands = 0 : i64, tpu.core_type = #tpu.core_type<tc>, window_params = [{transform_indices = @transform_0, window_bounds = array<i64: 16, 128>}, {transform_indices = @transform_1, window_bounds = array<i64: 16, 128>}, {transform_indices = @transform_2, window_bounds = array<i64: 8, 128>}]} {
    %c0_i32 = arith.constant 0 : i32
    %0 = arith.cmpi eq, %arg1, %c0_i32 : i32
    %1 = arith.extui %0 : i1 to i32
    %c0_i32_0 = arith.constant 0 : i32
    %2 = arith.cmpi ne, %1, %c0_i32_0 : i32
    scf.if %2 {
      %cst_9 = arith.constant 0.000000e+00 : f32
      %22 = vector.broadcast %cst_9 : f32 to vector<8x128xf32>
      %c0_10 = arith.constant 0 : index
      %c0_11 = arith.constant 0 : index
      %23 = vector.load %arg4[%c0_10, %c0_11] : memref<8x128xf32, #tpu.memory_space<vmem>>, vector<8x128xf32>
      tpu.vector_store %arg4[%c0_10, %c0_11], %22 {strides = array<i32>} : memref<8x128xf32, #tpu.memory_space<vmem>>, vector<8x128xf32>,
    } else {
    }
    %c0 = arith.constant 0 : index
    %c0_1 = arith.constant 0 : index
    %3 = vector.load %arg4[%c0, %c0_1] : memref<8x128xf32, #tpu.memory_space<vmem>>, vector<8x128xf32>
    %cst = arith.constant 0.000000e+00 : f32
    %4 = vector.broadcast %cst : f32 to vector<8x128xf32>
    %cst_2 = arith.constant 9.99999993E-9 : f32
    %c0_i32_3 = arith.constant 0 : i32
    %c16_i32 = arith.constant 16 : i32
    %5 = arith.muli %c0_i32_3, %c16_i32 : i32
    %6 = tpu.assume_multiple %5, 16 : i32
    %7 = arith.index_cast %6 : i32 to index
    %c0_4 = arith.constant 0 : index
    %8 = vector.load %arg2[%7, %c0_4] : memref<16x128xf32, #tpu.memory_space<vmem>>, vector<16x128xf32>
    %9 = arith.index_cast %6 : i32 to index
    %c0_5 = arith.constant 0 : index
    %10 = vector.load %arg3[%9, %c0_5] : memref<16x128xf32, #tpu.memory_space<vmem>>, vector<16x128xf32>
    %11 = arith.subf %8, %10 : vector<16x128xf32>
    %12 = math.absf %11 : vector<16x128xf32>
    %13 = math.absf %10 : vector<16x128xf32>
    %14 = vector.broadcast %cst_2 : f32 to vector<16x128xf32>
    %15 = arith.addf %13, %14 : vector<16x128xf32>
    %16 = arith.divf %12, %15 : vector<16x128xf32>
    %17 = vector.shape_cast %16 : vector<16x128xf32> to vector<2x8x128xf32>
    %cst_6 = arith.constant dense<0.000000e+00> : vector<8x128xf32>
    %18 = vector.multi_reduction <add>, %17, %cst_6 [0] : vector<2x8x128xf32> to vector<8x128xf32>
    %19 = arith.addf %4, %18 : vector<8x128xf32>
    %c1_i32 = arith.constant 1 : i32
    %20 = arith.addf %3, %19 : vector<8x128xf32>
    %c0_7 = arith.constant 0 : index
    %c0_8 = arith.constant 0 : index
    %21 = vector.load %arg4[%c0_7, %c0_8] : memref<8x128xf32, #tpu.memory_space<vmem>>, vector<8x128xf32>
    tpu.vector_store %arg4[%c0_7, %c0_8], %20 {strides = array<i32>} : memref<8x128xf32, #tpu.memory_space<vmem>>, vector<8x128xf32>,
    return
  }
  func.func @transform_0(%arg0: i32, %arg1: i32) -> (i32, i32) {
    %c1_i32 = arith.constant 1 : i32
    %0 = arith.muli %arg0, %c1_i32 : i32
    %1 = arith.addi %0, %arg1 : i32
    %c0_i32 = arith.constant 0 : i32
    %c0_i32_0 = arith.constant 0 : i32
    return %1, %c0_i32 : i32, i32
  }
  func.func @transform_1(%arg0: i32, %arg1: i32) -> (i32, i32) {
    %c1_i32 = arith.constant 1 : i32
    %0 = arith.muli %arg0, %c1_i32 : i32
    %1 = arith.addi %0, %arg1 : i32
    %c0_i32 = arith.constant 0 : i32
    %c0_i32_0 = arith.constant 0 : i32
    return %1, %c0_i32 : i32, i32
  }
  func.func @transform_2(%arg0: i32, %arg1: i32) -> (i32, i32) {
    %c0_i32 = arith.constant 0 : i32
    %c0_i32_0 = arith.constant 0 : i32
    return %arg0, %c0_i32 : i32, i32
  }
}

</mosaic_0001>

<bundles_post_ra>
// kernel: tpu_custom_call.1
= control target key start
LH: loop header
LB: loop body
LE: loop exit
PB: predicated region body
PF: predicated region fallthrough
CT: control target
= control target key end

     0   :  { %7 = vsyncpa [#allocation3], 0  ;;  %s243_s0 = inlined_call_operand.hbm [shape: f32[16,128], index: 0, kind: input, shape index: {}]   ;;  %s244_s1 = inlined_call_operand.hbm [shape: f32[16,128], index: 1, kind: input, shape index: {}]   ;;  %s245_s2 = inlined_call_operand.hbm [shape: f32[8,128], index: 2, kind: output, shape index: {}]  }
   0x1   :  { %8 = vsyncpa [#allocation6], 0 }
   0x2   :  { %9 = vsyncpa [#allocation4], 0  ;;  %s18_s11 = sshll.u32 %s243_s0, 4  ;;  %s214_s12 = smov [#allocation2]   ;;  %s19_s11 = int_to_ptr.hbm [resolvable:$true] %s18_s11 }
   0x3   :  { %s20_s13 = sshll.u32 %s214_s12, 4  ;;  %s35_s16 = sshll.u32 %s244_s1, 4  ;;  %s21_s13 = int_to_ptr.vmem [resolvable:$true] %s20_s13  ;;  %s36_s16 = int_to_ptr.hbm [resolvable:$true] %s35_s16 }
   0x4   :  { %s215_s17 = smov 128   ;;  %s216_s18 = smov 8  }
   0x5   :  { %26 = dma.hbm_to_vmem [thread:$0]  %s19_s11, 256, %s21_s13, [#allocation3], %s215_s17, %s215_s17, %s216_s18  }
   0x6   :  { %s217_s19 = smov [#allocation5]  }
   0x7   :  { %s37_s20 = sshll.u32 %s217_s19, 4  ;;  %s38_s20 = int_to_ptr.vmem [resolvable:$true] %s37_s20 }
   0x8   :  { %43 = dma.hbm_to_vmem [thread:$0]  %s36_s16, 256, %s38_s20, [#allocation6], %s215_s17, %s215_s17, %s216_s18  }
   0x9   :  { %208 = dma.done.wait [#allocation3], 256  }
   0xa   :  { %209 = vsyncadd [#allocation3], 4294967040 }
   0xb   :  { %210 = dma.done.wait [#allocation6], 256  }
   0xc   :  { %211 = vsyncadd [#allocation6], 4294967040  ;;  %v64_v0 = vld [vmem:[#allocation5] sm:$0xff]  ;;  %v65_v1 = vld [vmem:[#allocation5 + $0x8] sm:$0xff]  ;;  %s218_s0 = smov [#allocation7]   ;;  %s115_s23 = sshll.u32 %s245_s2, 4  ;;  %s116_s23 = int_to_ptr.hbm [resolvable:$true] %s115_s23 }
   0xd   :  { %v70_v2 = vand.u32 2147483647, %v64_v0  ;;  %v71_v3 = vand.u32 2147483647, %v65_v1  ;;  %v62_v6 = vld [vmem:[#allocation2] sm:$0xff]  ;;  %v63_v7 = vld [vmem:[#allocation2 + $0x8] sm:$0xff] }
   0xe   :  { %v66_v10 = vsub.f32 %v62_v6, %v64_v0  ;;  %v67_v12 = vsub.f32 %v63_v7, %v65_v1  ;;  %s113_s1 = sshll.u32 %s218_s0, 4  ;;  %s114_s1 = int_to_ptr.vmem [resolvable:$true] %s113_s1 }
   0xf   :  { %v72_v4 = vadd.f32 1e-08, %v70_v2  ;;  %v73_v5 = vadd.f32 1e-08, %v71_v3 }
  0x10   :  { %v68_v23 = vand.u32 2147483647, %v66_v10  ;;  %v69_v26 = vand.u32 2147483647, %v67_v12 }
  0x11   :  { %132 = vrcp.f32 %v72_v4  ;;  %vm79_vm0 = vweird.f32 %v72_v4  ;;  %v85_v13 = vand.u32 2147483648, %v72_v4  ;;  %v83_v16 = vand.u32 2147483647, %v72_v4 }
  0x12   :  { %134 = vrcp.f32 %v73_v5  ;;  %v100_v17 = vand.u32 2147483648, %v73_v5  ;;  %vm94_vm2 = vweird.f32 %v73_v5  ;;  %v98_v19 = vand.u32 2147483647, %v73_v5 }
  0x13   :  { %v86_v21 = vor.u32 1.1754944e-38, %v85_v13  ;;  %vm84_vm5 = vcmp.eq.f32.partialorder %v83_v16, 8.507059e+37 }
  0x14   :  { %v101_v25 = vor.u32 1.1754944e-38, %v100_v17  ;;  %vm99_vm7 = vcmp.eq.f32.partialorder %v98_v19, 8.507059e+37 }
  0x17   :  { %v133_v8 = vpop.eup %132 }
  0x18   :  { %v135_v9 = vpop.eup %134  ;;  %v75_v11 = vmul.f32 %v133_v8, %v72_v4  ;;  %vm80_vm1 = vweird.f32 %v133_v8 }
  0x19   :  { %v90_v14 = vmul.f32 %v135_v9, %v73_v5  ;;  %vm95_vm3 = vweird.f32 %v135_v9  ;;  %vm81_vm4 = vmor %vm79_vm0, %vm80_vm1 }
  0x1a   :  { %v76_v15 = vsub.f32 1.0, %v75_v11  ;;  %vm96_vm6 = vmor %vm94_vm2, %vm95_vm3 }
  0x1b   :  { %v91_v18 = vsub.f32 1.0, %v90_v14 }
  0x1c   :  { %v77_v20 = vmul.f32 %v133_v8, %v76_v15 }
  0x1d   :  { %v92_v22 = vmul.f32 %v135_v9, %v91_v18 }
  0x1e   :  { %v78_v24 = vadd.f32 %v133_v8, %v77_v20 }
  0x1f   :  { %v93_v27 = vadd.f32 %v135_v9, %v92_v22 }
  0x20   :  { %v82_v28 = vsel %vm81_vm4, %v133_v8, %v78_v24 }
  0x21   :  { %v87_v29 = vsel %vm84_vm5, %v86_v21, %v82_v28  ;;  %v97_v30 = vsel %vm96_vm6, %v135_v9, %v93_v27 }
  0x22   :  { %v88_v31 = vmul.f32 %v87_v29, %v68_v23  ;;  %v102_v32 = vsel %vm99_vm7, %v101_v25, %v97_v30 }
  0x23   :  { %v103_v33 = vmul.f32 %v102_v32, %v69_v26 }
  0x25   :  { %v104_v34 = vadd.f32 %v103_v33, %v88_v31 }
  0x27   :  { %107 = vst [vmem:[#allocation7] sm:$0xff] %v104_v34 }
  0x28   :  { %118 = dma.vmem_to_hbm [thread:$0]  %s114_s1, 128, %s116_s23, [#allocation4]  }
  0x29   :  { %212 = dma.done.wait [#allocation4], 128  }
  0x2a   :  { %213 = vsyncadd [#allocation4], 4294967168 }
  0x2b   :  { %123 = vsyncpa [#allocation3], 1 }
  0x2c   :  { %124 = vsyncpa [#allocation6], 1 }
  0x2d   :  { %125 = vsyncpa [#allocation4], 1 }

</bundles_post_ra>
